<compile_context>
chip_gen: v6e
topology: v6e:2x2x1
jax: 0.10.0
libtpu: 0.0.40
codegen_flags: <defaults>
</compile_context>

<pallas_src>
import math

import jax
import jax.numpy as jnp
from jax.experimental import pallas as pl
from jax.experimental.pallas import tpu as pltpu


# --------------------------------------------------------------------------- #
# Small host-side helpers
# --------------------------------------------------------------------------- #
def _cdiv(a, b):
    return -(-a // b)


def _lcm(a, b):
    return a * b // math.gcd(a, b)


def _sublane_unit(dtype):
    # f32 -> 8 rows / vreg, bf16 -> 16, int8/fp8 -> 32 (sub-32-bit packs sublanes)
    return max(8, 32 // jnp.dtype(dtype).itemsize)


def _tpu_generation():
    try:
        kind = jax.devices()[0].device_kind.lower()
    except Exception:
        return "unknown"
    if "v7" in kind or "7x" in kind:
        return "v7x"
    if "v6" in kind:
        return "v6e"
    if "v5" in kind:
        return "v5e"
    return "unknown"


# Per-generation: tile budget (bytes / tensor / buffer), VMEM we are willing to
# plan for, and physical VMEM cap (v7x has only 64 MiB per TensorCore).
_GEN_CFG = {
    "v5e":     dict(tile_bytes=2 << 20, vmem_cap=64 << 20, phys=128 << 20),
    "v6e":     dict(tile_bytes=4 << 20, vmem_cap=64 << 20, phys=128 << 20),
    "v7x":     dict(tile_bytes=2 << 20, vmem_cap=48 << 20, phys=64 << 20),
    "unknown": dict(tile_bytes=2 << 20, vmem_cap=48 << 20, phys=64 << 20),
}


def _make_index_map(n_tiles, grid_len):
    if n_tiles == grid_len:
        return lambda i: (i, 0)
    last = n_tiles - 1
    return lambda i: (jnp.minimum(i, last), 0)


def _plan_equal_tiles(rows, sus, grid_len):
    """Per-tensor tile heights such that every tensor splits into exactly
    `grid_len` tiles (sublane-aligned).  Returns None if infeasible."""
    tile_rs = []
    for r, su in zip(rows, sus):
        tr = su * _cdiv(r, grid_len * su)
        if tr <= 0 or _cdiv(r, tr) != grid_len:
            return None
        tile_rs.append(tr)
    return tile_rs


def _footprint(tile_rs, C, itemsizes, emb_itemsize):
    # 2 (double-buffer) x (in + out) per tensor + double-buffered emb + slack.
    body = 4 * sum(tr * C * isz for tr, isz in zip(tile_rs, itemsizes))
    emb = 2 * 3 * C * emb_itemsize
    return body + emb + (2 << 20)


# --------------------------------------------------------------------------- #
# Kernel
# --------------------------------------------------------------------------- #
def _make_fused_kernel(n_tiles, grid_len):
    def kernel(lang_ref, frames_ref, actions_ref, emb_ref,
               lang_out_ref, frames_out_ref, actions_out_ref):
        i = pl.program_id(0)
        per_tensor = (
            (lang_ref, lang_out_ref, 0, n_tiles[0]),
            (frames_ref, frames_out_ref, 1, n_tiles[1]),
            (actions_ref, actions_out_ref, 2, n_tiles[2]),
        )
        for x_ref, o_ref, token_id, n_t in per_tensor:
            def write(x_ref=x_ref, o_ref=o_ref, token_id=token_id):
                row = emb_ref[token_id:token_id + 1, :]          # (1, C)
                o_ref[...] = (x_ref[...] + row).astype(o_ref.dtype)
            if n_t == grid_len:
                write()                  # equalized path: owns every grid step
            else:
                pl.when(i < n_t)(write)  # fallback path only ("arbitrary")
    return kernel


# --------------------------------------------------------------------------- #
# Wrapper
# --------------------------------------------------------------------------- #
def token_learned_encoding_fwd(lang, frames, actions, emb_weight,
                               *, target_tile_bytes=None, force_clamped=False):
    """Fused broadcast-add of emb_weight[0/1/2] onto lang/frames/actions."""
    xs = (lang, frames, actions)
    D = lang.shape[-1]
    assert all(x.shape[-1] == D for x in xs)
    assert emb_weight.shape[-1] == D and emb_weight.shape[0] >= 3
    emb3 = emb_weight[:3]

    gen = _tpu_generation()
    cfg = _GEN_CFG[gen]
    tile_bytes = int(target_tile_bytes) if target_tile_bytes else int(cfg["tile_bytes"])
    vmem_cap = cfg["vmem_cap"]
    phys_cap = cfg["phys"]

    # ---- Lane densification: fold rows so the last dim is a multiple of 128
    # (C = lcm(D, 128), capped) -> full-lane unmasked stores.
    reps = 1
    if D % 128 != 0:
        C_l = _lcm(D, 128)
        if C_l <= 1024 and all(x.size % C_l == 0 and x.size >= C_l for x in xs):
            reps = C_l // D
    C = D * reps
    xs2d = [x.reshape(-1, C) for x in xs]
    emb_wide = jnp.tile(emb3, (1, reps)) if reps > 1 else emb3

    rows = [x.shape[0] for x in xs2d]
    sus = [_sublane_unit(x.dtype) for x in xs2d]
    itemsizes = [jnp.dtype(x.dtype).itemsize for x in xs2d]
    emb_isz = jnp.dtype(emb_wide.dtype).itemsize

    # Budget tile rows per tensor (generation-sized, dtype-aware sublane round).
    tr_budget = [max(su, (tile_bytes // (C * isz)) // su * su)
                 for su, isz in zip(sus, itemsizes)]

    imax = max(range(3), key=lambda t: rows[t])
    g0 = max(1, _cdiv(rows[imax], tr_budget[imax]))

    # ---- Preferred path: equalized tile counts -> "parallel" grid.
    chosen = None
    if not force_clamped:
        candidates = []
        if gen == "v7x" and g0 > 1 and g0 % 2 == 1:
            candidates.append(g0 + 1)        # even grid -> balanced 2-TC split
        candidates.extend(range(g0, 0, -1))
        for g in candidates:
            tile_rs = _plan_equal_tiles(rows, sus, g)
            if tile_rs is None:
                continue
            foot = _footprint(tile_rs, C, itemsizes, emb_isz)
            if foot <= vmem_cap:
                chosen = (g, tile_rs, foot)
                break

    if chosen is not None:
        grid_len, tile_rs, footprint = chosen
        n_tiles = (grid_len,) * 3
        semantics = "parallel"               # no revisits -> safe with aliasing
    else:
        # Fallback: clamped block indices + pl.when-guarded stores.  Must stay
        # "arbitrary" (sequential) so the resident-output-block trick is safe
        # with input/output aliasing.
        tile_rs = tr_budget
        n_tiles = tuple(_cdiv(r, tr) for r, tr in zip(rows, tile_rs))
        grid_len = max(n_tiles)
        footprint = _footprint(tile_rs, C, itemsizes, emb_isz)
        semantics = "arbitrary"

    vmem_limit = int(min(max(footprint, 8 << 20), phys_cap))

    x_specs = [pl.BlockSpec((tr, C), _make_index_map(n, grid_len))
               for tr, n in zip(tile_rs, n_tiles)]
    emb_spec = pl.BlockSpec((3, C), lambda i: (0, 0))    # resident in VMEM
    out_specs = tuple(pl.BlockSpec((tr, C), _make_index_map(n, grid_len))
                      for tr, n in zip(tile_rs, n_tiles))
    out_shape = tuple(jax.ShapeDtypeStruct(x.shape, x.dtype) for x in xs2d)

    outs = pl.pallas_call(
        _make_fused_kernel(n_tiles, grid_len),
        out_shape=out_shape,
        grid=(grid_len,),
        in_specs=x_specs + [emb_spec],
        out_specs=out_specs,
        input_output_aliases={0: 0, 1: 1, 2: 2},
        compiler_params=pltpu.CompilerParams(
            dimension_semantics=(semantics,),
            vmem_limit_bytes=vmem_limit,
        ),
    )(*xs2d, emb_wide)

    return tuple(o.reshape(x.shape) for o, x in zip(outs, xs))


class TokenLearnedEncoding:
    """JAX/Pallas port of the PyTorch TokenLearnedEncoding module."""

    def __init__(self, d_model, vocab_size=3, init_range=0.1, key=None):
        if key is None:
            key = jax.random.PRNGKey(0)
        # Matches emb.weight.data.uniform_(-init_range, init_range).
        self.emb_weight = jax.random.uniform(
            key, (vocab_size, d_model), dtype=jnp.float32,
            minval=-init_range, maxval=init_range,
        )

    def __call__(self, lang, frames, actions):
        # token ids: lang -> 0, frames -> 1, actions -> 2
        return token_learned_encoding_fwd(
            lang, frames, actions, self.emb_weight[:3])


# --------------------------------------------------------------------------- #
# Self-test
# --------------------------------------------------------------------------- #
def _reference(xs, w):
    outs = []
    for x, row in zip(xs, (w[0], w[1], w[2])):
        o = (x.astype(jnp.float32)
             + row.astype(jnp.float32)[None, None, :]).astype(x.dtype)
        outs.append(o)
    return tuple(outs)


def _check(out, ref, atol):
    for o, r in zip(out, ref):
        assert o.shape == r.shape and o.dtype == r.dtype
        assert jnp.allclose(o.astype(jnp.float32), r.astype(jnp.float32),
                            atol=atol), float(jnp.max(jnp.abs(
                                o.astype(jnp.float32) - r.astype(jnp.float32))))


if __name__ == "__main__":
    key = jax.random.PRNGKey(0)
    k_w, k_l, k_f, k_a = jax.random.split(key, 4)

    B, D = 2, 32
    module = TokenLearnedEncoding(d_model=D, key=k_w)
    w = module.emb_weight

    # --- Test 1: equal sequence lengths, f32 (common path, single step).
    lang = jax.random.normal(k_l, (B, 8, D), dtype=jnp.float32)
    frames = jax.random.normal(k_f, (B, 8, D), dtype=jnp.float32)
    actions = jax.random.normal(k_a, (B, 8, D), dtype=jnp.float32)
    ref = _reference((lang, frames, actions), w)
    out = module(lang, frames, actions)
    jax.block_until_ready(out)
    _check(out, ref, 1e-6)

    # --- Test 2: unequal sequence lengths, default (generation-sized) tiles.
    lang2 = jax.random.normal(k_l, (B, 8, D), dtype=jnp.float32)
    frames2 = jax.random.normal(k_f, (B, 24, D), dtype=jnp.float32)
    actions2 = jax.random.normal(k_a, (B, 16, D), dtype=jnp.float32)
    ref2 = _reference((lang2, frames2, actions2), w)
    out2 = token_learned_encoding_fwd(lang2, frames2, actions2, w)
    jax.block_until_ready(out2)
    _check(out2, ref2, 1e-6)

    # --- Test 3: unequal lengths + tiny tile budget -> multi-step EQUALIZED
    # grid (per-tensor tile heights, "parallel" semantics, no clamping).
    lang3 = jax.random.normal(k_l, (B, 128, D), dtype=jnp.float32)
    frames3 = jax.random.normal(k_f, (B, 256, D), dtype=jnp.float32)
    actions3 = jax.random.normal(k_a, (B, 192, D), dtype=jnp.float32)
    ref3 = _reference((lang3, frames3, actions3), w)
    out3 = token_learned_encoding_fwd(lang3, frames3, actions3, w,
                                      target_tile_bytes=4096)
    jax.block_until_ready(out3)
    _check(out3, ref3, 1e-6)

    # --- Test 4: same shapes, forced clamped fallback path (exercises the
    # "arbitrary" + pl.when-guarded store machinery kept for infeasible cases).
    out4 = token_learned_encoding_fwd(lang3, frames3, actions3, w,
                                      target_tile_bytes=4096,
                                      force_clamped=True)
    jax.block_until_ready(out4)
    _check(out4, ref3, 1e-6)

    # --- Test 5: bf16 inputs (dtype-aware 16-row sublane rounding).
    lang5 = jax.random.normal(k_l, (B, 16, D), dtype=jnp.bfloat16)
    frames5 = jax.random.normal(k_f, (B, 16, D), dtype=jnp.bfloat16)
    actions5 = jax.random.normal(k_a, (B, 16, D), dtype=jnp.bfloat16)
    ref5 = _reference((lang5, frames5, actions5), w)
    out5 = token_learned_encoding_fwd(lang5, frames5, actions5, w)
    jax.block_until_ready(out5)
    _check(out5, ref5, 2e-2)

    # --- Test 6: d_model = 96 -> lcm(96, 128) = 384 lane-densification path.
    D6 = 96
    module6 = TokenLearnedEncoding(d_model=D6, key=k_w)
    w6 = module6.emb_weight
    lang6 = jax.random.normal(k_l, (B, 8, D6), dtype=jnp.float32)
    frames6 = jax.random.normal(k_f, (B, 8, D6), dtype=jnp.float32)
    actions6 = jax.random.normal(k_a, (B, 8, D6), dtype=jnp.float32)
    ref6 = _reference((lang6, frames6, actions6), w6)
    out6 = module6(lang6, frames6, actions6)
    jax.block_until_ready(out6)
    _check(out6, ref6, 1e-6)

    print("KERNEL_OK")
</pallas_src>

<mosaic_0001>
module attributes {stable_mosaic.version = 11 : i64} {
  func.func @kernel(%arg0: i32, %arg1: memref<8x128xf32, #tpu.memory_space<vmem>>, %arg2: memref<8x128xf32, #tpu.memory_space<vmem>>, %arg3: memref<8x128xf32, #tpu.memory_space<vmem>>, %arg4: memref<3x128xf32, #tpu.memory_space<vmem>>, %arg5: memref<8x128xf32, #tpu.memory_space<vmem>>, %arg6: memref<8x128xf32, #tpu.memory_space<vmem>>, %arg7: memref<8x128xf32, #tpu.memory_space<vmem>>) attributes {dimension_semantics = [#tpu.dimension_semantics<parallel>], iteration_bounds = array<i64: 1>, scalar_prefetch = 0 : i64, scratch_operands = 0 : i64, tpu.core_type = #tpu.core_type<tc>, window_params = [{transform_indices = @transform_0, window_bounds = array<i64: 8, 128>}, {transform_indices = @transform_1, window_bounds = array<i64: 8, 128>}, {transform_indices = @transform_2, window_bounds = array<i64: 8, 128>}, {pipeline_mode = #tpu.pipeline_mode<synchronous>, transform_indices = @transform_3, window_bounds = array<i64: 3, 128>}, {transform_indices = @transform_4, window_bounds = array<i64: 8, 128>}, {transform_indices = @transform_5, window_bounds = array<i64: 8, 128>}, {transform_indices = @transform_6, window_bounds = array<i64: 8, 128>}]} {
    %c0 = arith.constant 0 : index
    %c0_0 = arith.constant 0 : index
    %0 = vector.load %arg4[%c0, %c0_0] : memref<3x128xf32, #tpu.memory_space<vmem>>, vector<1x128xf32>
    %c0_1 = arith.constant 0 : index
    %c0_2 = arith.constant 0 : index
    %1 = vector.load %arg1[%c0_1, %c0_2] : memref<8x128xf32, #tpu.memory_space<vmem>>, vector<8x128xf32>
    %2 = vector.broadcast %0 : vector<1x128xf32> to vector<8x128xf32>
    %3 = arith.addf %1, %2 : vector<8x128xf32>
    %c0_3 = arith.constant 0 : index
    %c0_4 = arith.constant 0 : index
    %4 = vector.load %arg5[%c0_3, %c0_4] : memref<8x128xf32, #tpu.memory_space<vmem>>, vector<8x128xf32>
    tpu.vector_store %arg5[%c0_3, %c0_4], %3 {strides = array<i32>} : memref<8x128xf32, #tpu.memory_space<vmem>>, vector<8x128xf32>,
    %c1 = arith.constant 1 : index
    %c0_5 = arith.constant 0 : index
    %5 = vector.load %arg4[%c1, %c0_5] : memref<3x128xf32, #tpu.memory_space<vmem>>, vector<1x128xf32>
    %c0_6 = arith.constant 0 : index
    %c0_7 = arith.constant 0 : index
    %6 = vector.load %arg2[%c0_6, %c0_7] : memref<8x128xf32, #tpu.memory_space<vmem>>, vector<8x128xf32>
    %7 = vector.broadcast %5 : vector<1x128xf32> to vector<8x128xf32>
    %8 = arith.addf %6, %7 : vector<8x128xf32>
    %c0_8 = arith.constant 0 : index
    %c0_9 = arith.constant 0 : index
    %9 = vector.load %arg6[%c0_8, %c0_9] : memref<8x128xf32, #tpu.memory_space<vmem>>, vector<8x128xf32>
    tpu.vector_store %arg6[%c0_8, %c0_9], %8 {strides = array<i32>} : memref<8x128xf32, #tpu.memory_space<vmem>>, vector<8x128xf32>,
    %c2 = arith.constant 2 : index
    %c0_10 = arith.constant 0 : index
    %10 = vector.load %arg4[%c2, %c0_10] : memref<3x128xf32, #tpu.memory_space<vmem>>, vector<1x128xf32>
    %c0_11 = arith.constant 0 : index
    %c0_12 = arith.constant 0 : index
    %11 = vector.load %arg3[%c0_11, %c0_12] : memref<8x128xf32, #tpu.memory_space<vmem>>, vector<8x128xf32>
    %12 = vector.broadcast %10 : vector<1x128xf32> to vector<8x128xf32>
    %13 = arith.addf %11, %12 : vector<8x128xf32>
    %c0_13 = arith.constant 0 : index
    %c0_14 = arith.constant 0 : index
    %14 = vector.load %arg7[%c0_13, %c0_14] : memref<8x128xf32, #tpu.memory_space<vmem>>, vector<8x128xf32>
    tpu.vector_store %arg7[%c0_13, %c0_14], %13 {strides = array<i32>} : memref<8x128xf32, #tpu.memory_space<vmem>>, vector<8x128xf32>,
    return
  }
  func.func @transform_0(%arg0: i32) -> (i32, i32) {
    %c0_i32 = arith.constant 0 : i32
    %c0_i32_0 = arith.constant 0 : i32
    return %arg0, %c0_i32 : i32, i32
  }
  func.func @transform_1(%arg0: i32) -> (i32, i32) {
    %c0_i32 = arith.constant 0 : i32
    %c0_i32_0 = arith.constant 0 : i32
    return %arg0, %c0_i32 : i32, i32
  }
  func.func @transform_2(%arg0: i32) -> (i32, i32) {
    %c0_i32 = arith.constant 0 : i32
    %c0_i32_0 = arith.constant 0 : i32
    return %arg0, %c0_i32 : i32, i32
  }
  func.func @transform_3(%arg0: i32) -> (i32, i32) {
    %c0_i32 = arith.constant 0 : i32
    %c0_i32_0 = arith.constant 0 : i32
    %c0_i32_1 = arith.constant 0 : i32
    return %c0_i32, %c0_i32_0 : i32, i32
  }
  func.func @transform_4(%arg0: i32) -> (i32, i32) {
    %c0_i32 = arith.constant 0 : i32
    %c0_i32_0 = arith.constant 0 : i32
    return %arg0, %c0_i32 : i32, i32
  }
  func.func @transform_5(%arg0: i32) -> (i32, i32) {
    %c0_i32 = arith.constant 0 : i32
    %c0_i32_0 = arith.constant 0 : i32
    return %arg0, %c0_i32 : i32, i32
  }
  func.func @transform_6(%arg0: i32) -> (i32, i32) {
    %c0_i32 = arith.constant 0 : i32
    %c0_i32_0 = arith.constant 0 : i32
    return %arg0, %c0_i32 : i32, i32
  }
}

</mosaic_0001>

<bundles_post_ra>
// kernel: tpu_custom_call.1
= control target key start
LH: loop header
LB: loop body
LE: loop exit
PB: predicated region body
PF: predicated region fallthrough
CT: control target
= control target key end

     0   :  { %12 = vsyncpa [#allocation3], 0  ;;  %s363_s0 = inlined_call_operand.hbm [shape: f32[4,128], index: 0, kind: input, shape index: {}, may-alias: {0,4}]   ;;  %s364_s1 = inlined_call_operand.hbm [shape: f32[4,128], index: 1, kind: input, shape index: {}, may-alias: {1,5}]   ;;  %s365_s2 = inlined_call_operand.hbm [shape: f32[4,128], index: 2, kind: input, shape index: {}, may-alias: {2,6}]   ;;  %s366_s3 = inlined_call_operand.vmem [shape: f32[3,128], index: 3, kind: input, shape index: {}]   ;;  %s367_s4 = inlined_call_operand.hbm [shape: f32[4,128], index: 4, kind: output, shape index: {0}, may-alias: {0,4}]   ;;  %s368_s5 = inlined_call_operand.hbm [shape: f32[4,128], index: 5, kind: output, shape index: {1}, may-alias: {1,5}]   ;;  %s369_s6 = inlined_call_operand.hbm [shape: f32[4,128], index: 6, kind: output, shape index: {2}, may-alias: {2,6}]  }
   0x1   :  { %13 = vsyncpa [#allocation6], 0 }
   0x2   :  { %14 = vsyncpa [#allocation4], 0 }
   0x3   :  { %15 = vsyncpa [#allocation10], 0 }
   0x4   :  { %20 = vsyncadd [#allocation3], 64  ;;  %s275_s21 = smov [#allocation2]  }
   0x5   :  { %s21_s22 = sshll.u32 %s275_s21, 4  ;;  %s22_s22 = int_to_ptr.vmem [resolvable:$true] %s21_s22 }
   0x6   :  { %s155_s23 = scalar_lea.vmem %s22_s22, 64  ;;  %s159_s24 = scalar_lea.vmem %s22_s22, 128 }
   0x7   :  { %p156_p0 = scmp.ne.s32.totalorder %s22_s22, %s155_s23  ;;  %p160_p1 = scmp.lt.s32.totalorder %s22_s22, %s22_s22 }
   0x8   :  { %p161_p2 = scmp.lt.s32.totalorder %s159_s24, %s155_s23 }
   0xa   :  { %p162_p3 = por %p161_p2, %p160_p1 }
   0xc   :  { %p163_p4 = pnand %p162_p3, %p156_p0 }
   0xe   :  { %166 = shalt.err (!%p163_p4)
}
   0xf   :  { %s276_s25 = smov 64   ;;  %s277_s26 = smov 4  }
  0x10   :  { %27 = dma.hbm_to_vmem [thread:$0]  %s363_s0, 64, %s22_s22, [#allocation3], %s276_s25, %s276_s25, %s277_s26  }
  0x11   :  { %32 = vsyncadd [#allocation6], 64  ;;  %s278_s29 = smov [#allocation5]  }
  0x12   :  { %s33_s30 = sshll.u32 %s278_s29, 4  ;;  %s34_s30 = int_to_ptr.vmem [resolvable:$true] %s33_s30 }
  0x13   :  { %s175_s7 = scalar_lea.vmem %s34_s30, 64  ;;  %s179_s8 = scalar_lea.vmem %s34_s30, 128 }
  0x14   :  { %p176_p5 = scmp.ne.s32.totalorder %s34_s30, %s175_s7  ;;  %p180_p6 = scmp.lt.s32.totalorder %s34_s30, %s34_s30 }
  0x15   :  { %p181_p7 = scmp.lt.s32.totalorder %s179_s8, %s175_s7 }
  0x17   :  { %p182_p8 = por %p181_p7, %p180_p6 }
  0x19   :  { %p183_p9 = pnand %p182_p8, %p176_p5 }
  0x1b   :  { %186 = shalt.err (!%p183_p9)
}
  0x1c   :  { %39 = dma.hbm_to_vmem [thread:$0]  %s364_s1, 64, %s34_s30, [#allocation6], %s276_s25, %s276_s25, %s277_s26  }
  0x1d   :  { %44 = vsyncadd [#allocation6], 64  ;;  %s279_s0 = smov [#allocation7]  }
  0x1e   :  { %s45_s11 = sshll.u32 %s279_s0, 4  ;;  %s46_s11 = int_to_ptr.vmem [resolvable:$true] %s45_s11 }
  0x1f   :  { %s195_s12 = scalar_lea.vmem %s46_s11, 64  ;;  %s199_s13 = scalar_lea.vmem %s46_s11, 128 }
  0x20   :  { %p196_p10 = scmp.ne.s32.totalorder %s46_s11, %s195_s12  ;;  %p200_p11 = scmp.lt.s32.totalorder %s46_s11, %s46_s11 }
  0x21   :  { %p201_p12 = scmp.lt.s32.totalorder %s199_s13, %s195_s12 }
  0x23   :  { %p202_p13 = por %p201_p12, %p200_p11 }
  0x25   :  { %p203_p0 = pnand %p202_p13, %p196_p10 }
  0x27   :  { %206 = shalt.err (!%p203_p0)
}
  0x28   :  { %51 = dma.hbm_to_vmem [thread:$0]  %s365_s2, 64, %s46_s11, [#allocation6], %s276_s25, %s276_s25, %s277_s26  }
  0x29   :  { %267 = dma.done.wait [#allocation3], 128  }
  0x2a   :  { %268 = vsyncadd [#allocation3], 4294967168 }
  0x2b   :  { %269 = dma.done.wait [#allocation6], 256  }
  0x2c   :  { %270 = vsyncadd [#allocation6], 4294967040  ;;  %v136_v0 = vld [vmem:[%s366_s3] ss:$0 sm:$0xff]  ;;  %v137_v2 = vld [vmem:[%s366_s3 + $0x1] ss:$0 sm:$0xff] }
  0x2d   :  { %v64_v1 = vld [vmem:[#allocation2] sm:$0xff]  ;;  %v72_v4 = vld [vmem:[#allocation5] sm:$0xff]  ;;  %v80_v6 = vld [vmem:[#allocation7] sm:$0xff] }
  0x2e   :  { %v69_v3 = vadd.f32 %v136_v0, %v64_v1  ;;  %v138_v5 = vld [vmem:[%s366_s3 + $0x2] ss:$0 sm:$0xff]  ;;  %v77_v7 = vadd.f32 %v137_v2, %v72_v4 }
  0x2f   :  { %v85_v8 = vadd.f32 %v138_v5, %v80_v6 }
  0x30   :  { %70 = vst [vmem:[#allocation8] sm:$0xff] %v69_v3  ;;  %78 = vst [vmem:[#allocation9] sm:$0xff] %v77_v7 }
  0x31   :  { %86 = vst [vmem:[#allocation11] sm:$0xff] %v85_v8 }
  0x32   :  { %91 = vsyncadd [#allocation4], 64  ;;  %s280_s2 = smov [#allocation8]  }
  0x33   :  { %s92_s21 = sshll.u32 %s280_s2, 4  ;;  %s93_s21 = int_to_ptr.vmem [resolvable:$true] %s92_s21 }
  0x34   :  { %s207_s22 = scalar_lea.vmem %s93_s21, 64  ;;  %s211_s23 = scalar_lea.vmem %s93_s21, 128 }
  0x35   :  { %p208_p1 = scmp.ne.s32.totalorder %s93_s21, %s207_s22  ;;  %p212_p2 = scmp.lt.s32.totalorder %s93_s21, %s93_s21 }
  0x36   :  { %p213_p3 = scmp.lt.s32.totalorder %s211_s23, %s207_s22 }
  0x38   :  { %p214_p4 = por %p213_p3, %p212_p2 }
  0x3a   :  { %p215_p5 = pnand %p214_p4, %p208_p1 }
  0x3c   :  { %218 = shalt.err (!%p215_p5)
}
  0x3d   :  { %98 = dma.vmem_to_hbm [thread:$0]  %s93_s21, 64, %s367_s4, [#allocation4], %s276_s25, %s276_s25, %s277_s26  }
  0x3e   :  { %103 = vsyncadd [#allocation10], 64  ;;  %s281_s27 = smov [#allocation9]  }
  0x3f   :  { %s104_s28 = sshll.u32 %s281_s27, 4  ;;  %s105_s28 = int_to_ptr.vmem [resolvable:$true] %s104_s28 }
  0x40   :  { %s227_s29 = scalar_lea.vmem %s105_s28, 64  ;;  %s231_s30 = scalar_lea.vmem %s105_s28, 128 }
  0x41   :  { %p228_p6 = scmp.ne.s32.totalorder %s105_s28, %s227_s29  ;;  %p232_p7 = scmp.lt.s32.totalorder %s105_s28, %s105_s28 }
  0x42   :  { %p233_p8 = scmp.lt.s32.totalorder %s231_s30, %s227_s29 }
  0x44   :  { %p234_p9 = por %p233_p8, %p232_p7 }
  0x46   :  { %p235_p10 = pnand %p234_p9, %p228_p6 }
  0x48   :  { %238 = shalt.err (!%p235_p10)
}
  0x49   :  { %110 = dma.vmem_to_hbm [thread:$0]  %s105_s28, 64, %s368_s5, [#allocation10], %s276_s25, %s276_s25, %s277_s26  }
  0x4a   :  { %115 = vsyncadd [#allocation10], 64  ;;  %s282_s4 = smov [#allocation11]  }
  0x4b   :  { %s116_s9 = sshll.u32 %s282_s4, 4  ;;  %s117_s9 = int_to_ptr.vmem [resolvable:$true] %s116_s9 }
  0x4c   :  { %s247_s10 = scalar_lea.vmem %s117_s9, 64  ;;  %s251_s0 = scalar_lea.vmem %s117_s9, 128 }
  0x4d   :  { %p248_p11 = scmp.ne.s32.totalorder %s117_s9, %s247_s10  ;;  %p252_p12 = scmp.lt.s32.totalorder %s117_s9, %s117_s9 }
  0x4e   :  { %p253_p13 = scmp.lt.s32.totalorder %s251_s0, %s247_s10 }
  0x50   :  { %p254_p0 = por %p253_p13, %p252_p12 }
  0x52   :  { %p255_p1 = pnand %p254_p0, %p248_p11 }
  0x54   :  { %258 = shalt.err (!%p255_p1)
}
  0x55   :  { %122 = dma.vmem_to_hbm [thread:$0]  %s117_s9, 64, %s369_s6, [#allocation10], %s276_s25, %s276_s25, %s277_s26  }
  0x56   :  { %271 = dma.done.wait [#allocation4], 128  }
  0x57   :  { %272 = vsyncadd [#allocation4], 4294967168 }
  0x58   :  { %273 = dma.done.wait [#allocation10], 256  }
  0x59   :  { %274 = vsyncadd [#allocation10], 4294967040 }
  0x5a   :  { %132 = vsyncpa [#allocation3], 1 }
  0x5b   :  { %133 = vsyncpa [#allocation6], 1 }
  0x5c   :  { %134 = vsyncpa [#allocation4], 1 }
  0x5d   :  { %135 = vsyncpa [#allocation10], 1 }

</bundles_post_ra>
